<compile_context>
chip_gen: v6e
topology: v6e:2x2x1
jax: 0.10.0
libtpu: 0.0.40
codegen_flags: <defaults>
</compile_context>

<pallas_src>
import functools

import jax
import jax.numpy as jnp
from jax import lax
from jax.experimental import pallas as pl
from jax.experimental.pallas import tpu as pltpu

# ---- "opt" configuration (synthetic, deterministic) -------------------------
N_CLASSES = 16          # opt.n_classes
EMBED_DIM = 32          # opt.embed_dim
MODE = "anchor"         # opt.loss_oproxy_mode  ('anchor' -> proxy_dim = 0)
PROXY_DIM = 1 if MODE == "nca" else 0
POS_ALPHA = 32.0        # opt.loss_oproxy_pos_alpha
POS_DELTA = 0.1         # opt.loss_oproxy_pos_delta
NEG_ALPHA = 32.0        # opt.loss_oproxy_neg_alpha
NEG_DELTA = -0.1        # opt.loss_oproxy_neg_delta
EPS = 1e-12             # F.normalize eps
F32_MIN = float(jnp.finfo(jnp.float32).min)


def _round_up(x, m):
    return (x + m - 1) // m * m


def _row_normalize(x):
    # F.normalize(x, dim=1): x / max(||x||, eps) == x * rsqrt(max(||x||^2, eps^2))
    # (rsqrt runs on the EUP slot inside the kernel).
    sumsq = jnp.sum(x * x, axis=-1, keepdims=True)
    return x * lax.rsqrt(jnp.maximum(sumsq, EPS * EPS))


def _proxy_anchor_tile_kernel(labels_ref, bT_ref, prox_ref, out_ref, *,
                              tile_c, n_classes, mxu_dtype,
                              pos_alpha, pos_delta, neg_alpha, neg_delta):
    i = pl.program_id(0)

    # Normalize this tile of the proxy table in f32, feed the MXU in mxu_dtype.
    p = _row_normalize(prox_ref[...].astype(jnp.float32))            # (TILE_C, D)
    bT = bT_ref[...]                                                  # (D, B), pre-normalized
    sims = jnp.dot(p.astype(mxu_dtype), bT,
                   preferred_element_type=jnp.float32)                # (TILE_C, B)

    labels = labels_ref[...]                                          # (1, B) int32
    b_cols = sims.shape[1]
    local_c = lax.broadcasted_iota(jnp.int32, (tile_c, b_cols), 0)
    global_c = local_c + i * tile_c
    valid = global_c < n_classes                                      # mask padded class rows
    same = jnp.logical_and(labels == global_c, valid)
    diff = jnp.logical_and(labels != global_c, valid)

    w_pos = -pos_alpha * (sims - pos_delta)
    w_neg = neg_alpha * (sims - neg_delta)

    # masked_fill + appended zeros slice + logsumexp(dim=0 of the original
    # (B, C) layout == last axis here), exactly as Criterion._masked_logsumexp,
    # but with a single exp per element: same/diff partition each valid row.
    m_pos = jnp.maximum(
        jnp.max(jnp.where(same, w_pos, F32_MIN), axis=-1, keepdims=True), 0.0)
    m_neg = jnp.maximum(
        jnp.max(jnp.where(diff, w_neg, F32_MIN), axis=-1, keepdims=True), 0.0)
    z = jnp.where(same, w_pos - m_pos, w_neg - m_neg)
    e = jnp.exp(z)
    pos_sum = jnp.sum(jnp.where(same, e, 0.0), axis=-1, keepdims=True) + jnp.exp(-m_pos)
    neg_sum = jnp.sum(jnp.where(diff, e, 0.0), axis=-1, keepdims=True) + jnp.exp(-m_neg)
    pos_lse = jnp.where(jnp.any(same, axis=-1, keepdims=True),
                        m_pos + jnp.log(pos_sum), 0.0)
    neg_lse = jnp.where(jnp.any(diff, axis=-1, keepdims=True),
                        m_neg + jnp.log(neg_sum), 0.0)

    # Per-tile partial sum over classes (mean over C is finished in the wrapper).
    out_ref[0] = jnp.sum(pos_lse + neg_lse, axis=0, keepdims=True)    # (1, 1)


@functools.partial(jax.jit, static_argnames=("tile_c", "mxu_dtype"))
def proxy_loss(batch, proxies, batch_proxies, labels, *,
               tile_c=None, mxu_dtype=jnp.bfloat16):
    """Mirrors Criterion.forward(batch, (proxies, batch_proxies), labels).

    With proxy_data_range='both_all', `batch_proxies` is normalized but does
    not affect the loss value, so it is not sent to the kernel.
    """
    del batch_proxies
    assert PROXY_DIM == 0, "only 'anchor' mode is implemented in the kernel"
    b_sz, d = batch.shape
    n_cls, d2 = proxies.shape
    assert d == d2

    # Class-tile size: >= 512 at production C; clamp/align for tiny test shapes.
    if tile_c is None:
        tile_c = min(512, _round_up(n_cls, 8))   # TODO(synk): ~halve on v7x (64 MiB VMEM)
    tile_c = max(8, _round_up(int(tile_c), 8))
    c_pad = _round_up(n_cls, tile_c)
    n_tiles = c_pad // tile_c

    # Hoisted out of the per-tile path: batch normalization (f32), transpose to
    # (D, B) so the per-tile matmul needs no in-kernel transpose, cast to the
    # MXU feed dtype.  Labels travel as one (1, B) int32 row.
    bT = _row_normalize(batch.astype(jnp.float32)).T.astype(mxu_dtype)   # (D, B)
    labels_row = labels.reshape(1, -1).astype(jnp.int32)                 # (1, B)

    prox = proxies
    if c_pad > n_cls:
        prox = jnp.pad(prox, ((0, c_pad - n_cls), (0, 0)))   # padded rows masked in-kernel

    kernel = functools.partial(
        _proxy_anchor_tile_kernel,
        tile_c=tile_c, n_classes=n_cls, mxu_dtype=mxu_dtype,
        pos_alpha=POS_ALPHA, pos_delta=POS_DELTA,
        neg_alpha=NEG_ALPHA, neg_delta=NEG_DELTA)

    # Explicit VMEM budget: double-buffered proxy tiles + resident batch^T /
    # labels + (TILE_C, B) intermediates, with lane padding and headroom.
    lanes_d = max(d, 128)
    lanes_b = max(b_sz, 128)
    vmem_limit = int(min(
        100 << 20,
        (8 << 20)
        + 2 * tile_c * lanes_d * jnp.dtype(prox.dtype).itemsize
        + 2 * _round_up(d, 8) * lanes_b * jnp.dtype(mxu_dtype).itemsize
        + 2 * 8 * lanes_b * 4
        + 8 * tile_c * lanes_b * 4))

    partials = pl.pallas_call(
        kernel,
        out_shape=jax.ShapeDtypeStruct((n_tiles, 1, 1), jnp.float32),
        grid_spec=pltpu.PrefetchScalarGridSpec(
            num_scalar_prefetch=0,
            grid=(n_tiles,),
            in_specs=[
                pl.BlockSpec((1, b_sz), lambda i: (0, 0)),        # labels row (resident)
                pl.BlockSpec((d, b_sz), lambda i: (0, 0)),        # normalized batch^T (resident)
                pl.BlockSpec((tile_c, d), lambda i: (i, 0)),      # proxy stream
                # TODO(synk): v7x — try pipeline_mode=pl.Buffered(3) on the proxy spec.
            ],
            out_specs=pl.BlockSpec((1, 1, 1), lambda i: (i, 0, 0)),
        ),
        compiler_params=pltpu.CompilerParams(
            dimension_semantics=("parallel",),
            vmem_limit_bytes=vmem_limit),
    )(labels_row, bT, prox)

    # pos_s.mean() + neg_s.mean(): both means are over all C classes (empty-mask
    # classes contribute 0), so sum of per-tile partials / C.
    return jnp.sum(partials) / n_cls


def _reference(batch, proxies, labels, matmul_dtype=jnp.float32):
    """Pure-JAX mirror of the PyTorch forward (both_all / anchor).

    `matmul_dtype` lets the similarity matmul run at the same precision as the
    kernel's MXU feed so the bf16 path can be checked tightly.
    """
    bn = _row_normalize(batch.astype(jnp.float32))
    pn = _row_normalize(proxies.astype(jnp.float32))
    sims = jnp.dot(bn.astype(matmul_dtype), pn.astype(matmul_dtype).T,
                   preferred_element_type=jnp.float32)                # (B, C)
    same = labels[:, None] == jnp.arange(proxies.shape[0])[None, :]
    diff = ~same
    w_pos = -POS_ALPHA * (sims - POS_DELTA)
    w_neg = NEG_ALPHA * (sims - NEG_DELTA)

    def mlse(x, mask, axis):
        xm = jnp.where(mask, x, F32_MIN)
        zshape = list(xm.shape)
        zshape[axis] = 1
        cat = jnp.concatenate([xm, jnp.zeros(zshape, xm.dtype)], axis=axis)
        lse = jax.scipy.special.logsumexp(cat, axis=axis, keepdims=True)
        return jnp.where(jnp.any(mask, axis=axis, keepdims=True), lse, 0.0)

    return (jnp.mean(mlse(w_pos, same, PROXY_DIM)) +
            jnp.mean(mlse(w_neg, diff, PROXY_DIM)))


if __name__ == "__main__":
    key = jax.random.PRNGKey(0)
    k1, k2, k3, k4 = jax.random.split(key, 4)

    B = 8
    batch = jax.random.normal(k1, (B, EMBED_DIM), dtype=jnp.float32)
    # Proxy "parameters": deterministic synthetic init (nn.Embedding-style).
    proxies = jax.random.normal(k2, (N_CLASSES, EMBED_DIM), dtype=jnp.float32)
    batch_proxies = jax.random.normal(k3, (B, EMBED_DIM), dtype=jnp.float32)
    labels = jax.random.randint(k4, (B,), 0, N_CLASSES, dtype=jnp.int32)

    # tile_c=8 -> a 2-tile grid even at the toy C=16, so the tiled "parallel"
    # path is actually exercised.  (Do NOT benchmark at these shapes — the
    # kernel is pure launch overhead here; production would use tile_c>=512.)
    loss_f32 = proxy_loss(batch, proxies, batch_proxies, labels,
                          tile_c=8, mxu_dtype=jnp.float32)
    loss_bf16 = proxy_loss(batch, proxies, batch_proxies, labels,
                           tile_c=8, mxu_dtype=jnp.bfloat16)
    loss_f32, loss_bf16 = jax.block_until_ready((loss_f32, loss_bf16))

    ref_f32 = _reference(batch, proxies, labels, jnp.float32)
    ref_bf16 = _reference(batch, proxies, labels, jnp.bfloat16)

    # Exact-precision path: tight check.
    assert jnp.allclose(loss_f32, ref_f32, rtol=1e-5, atol=1e-5), (loss_f32, ref_f32)
    # bf16 MXU feed vs a precision-matched reference: tight check.
    assert jnp.allclose(loss_bf16, ref_bf16, rtol=1e-3, atol=1e-3), (loss_bf16, ref_bf16)
    # bf16 MXU feed vs pure-f32 math: bounded by alpha * bf16 rounding (<~0.25
    # at alpha=32, unit-norm rows), so 0.3 absolute is a guaranteed-safe bound.
    assert jnp.allclose(loss_bf16, ref_f32, rtol=0.0, atol=0.3), (loss_bf16, ref_f32)

    print("KERNEL_OK")
</pallas_src>

<mosaic_0001>
module attributes {stable_mosaic.version = 11 : i64} {
  func.func @_proxy_anchor_tile_kernel(%arg0: i32, %arg1: memref<1x8xi32, #tpu.memory_space<vmem>>, %arg2: memref<32x8xf32, #tpu.memory_space<vmem>>, %arg3: memref<8x32xf32, #tpu.memory_space<vmem>>, %arg4: memref<1x1x1xf32, #tpu.memory_space<vmem>>) attributes {dimension_semantics = [#tpu.dimension_semantics<parallel>], iteration_bounds = array<i64: 2>, scalar_prefetch = 0 : i64, scratch_operands = 0 : i64, tpu.core_type = #tpu.core_type<tc>, window_params = [{pipeline_mode = #tpu.pipeline_mode<synchronous>, transform_indices = @transform_0, window_bounds = array<i64: 1, 8>}, {pipeline_mode = #tpu.pipeline_mode<synchronous>, transform_indices = @transform_1, window_bounds = array<i64: 32, 8>}, {transform_indices = @transform_2, window_bounds = array<i64: 8, 32>}, {transform_indices = @transform_3, window_bounds = array<i64: 1, 1, 1>}]} {
    %c0 = arith.constant 0 : index
    %c0_0 = arith.constant 0 : index
    %0 = vector.load %arg3[%c0, %c0_0] : memref<8x32xf32, #tpu.memory_space<vmem>>, vector<8x32xf32>
    %1 = arith.mulf %0, %0 : vector<8x32xf32>
    %cst = arith.constant dense<0.000000e+00> : vector<8xf32>
    %2 = vector.multi_reduction <add>, %1, %cst [1] : vector<8x32xf32> to vector<8xf32>
    %3 = vector.shape_cast %2 : vector<8xf32> to vector<8x1xf32>
    %cst_1 = arith.constant 1.000000e-24 : f32
    %4 = vector.broadcast %cst_1 : f32 to vector<8x1xf32>
    %5 = arith.maximumf %3, %4 : vector<8x1xf32>
    %6 = math.rsqrt %5 : vector<8x1xf32>
    %7 = vector.broadcast %6 : vector<8x1xf32> to vector<8x32xf32>
    %8 = arith.mulf %0, %7 : vector<8x32xf32>
    %c0_2 = arith.constant 0 : index
    %c0_3 = arith.constant 0 : index
    %9 = vector.load %arg2[%c0_2, %c0_3] : memref<32x8xf32, #tpu.memory_space<vmem>>, vector<32x8xf32>
    %cst_4 = arith.constant dense<0.000000e+00> : vector<8x8xf32>
    %10 = tpu.matmul %8, %9, %cst_4 {dimension_numbers = #tpu.dot_dimension_numbers<[1], [0], [0], [1], [0, 0, 1, 1], [], []>} : vector<8x32xf32>, vector<32x8xf32>, vector<8x8xf32> -> vector<8x8xf32>
    %c0_5 = arith.constant 0 : index
    %c0_6 = arith.constant 0 : index
    %11 = vector.load %arg1[%c0_5, %c0_6] : memref<1x8xi32, #tpu.memory_space<vmem>>, vector<1x8xi32>
    %12 = tpu.iota {dimensions = array<i32: 0>} : vector<8x8xi32>
    %c8_i32 = arith.constant 8 : i32
    %13 = arith.muli %arg0, %c8_i32 : i32
    %14 = vector.broadcast %13 : i32 to vector<8x8xi32>
    %15 = arith.addi %12, %14 : vector<8x8xi32>
    %c16_i32 = arith.constant 16 : i32
    %16 = vector.broadcast %c16_i32 : i32 to vector<8x8xi32>
    %17 = arith.cmpi slt, %15, %16 : vector<8x8xi32>
    %18 = vector.broadcast %11 : vector<1x8xi32> to vector<8x8xi32>
    %19 = arith.cmpi eq, %18, %15 : vector<8x8xi32>
    %20 = arith.andi %19, %17 : vector<8x8xi1>
    %21 = vector.broadcast %11 : vector<1x8xi32> to vector<8x8xi32>
    %22 = arith.cmpi ne, %21, %15 : vector<8x8xi32>
    %23 = arith.andi %22, %17 : vector<8x8xi1>
    %cst_7 = arith.constant 1.000000e-01 : f32
    %24 = vector.broadcast %cst_7 : f32 to vector<8x8xf32>
    %25 = arith.subf %10, %24 : vector<8x8xf32>
    %cst_8 = arith.constant -3.200000e+01 : f32
    %26 = vector.broadcast %cst_8 : f32 to vector<8x8xf32>
    %27 = arith.mulf %26, %25 : vector<8x8xf32>
    %cst_9 = arith.constant -1.000000e-01 : f32
    %28 = vector.broadcast %cst_9 : f32 to vector<8x8xf32>
    %29 = arith.subf %10, %28 : vector<8x8xf32>
    %cst_10 = arith.constant 3.200000e+01 : f32
    %30 = vector.broadcast %cst_10 : f32 to vector<8x8xf32>
    %31 = arith.mulf %30, %29 : vector<8x8xf32>
    %cst_11 = arith.constant -3.40282347E+38 : f32
    %32 = vector.broadcast %cst_11 : f32 to vector<8x8xf32>
    %33 = arith.select %20, %27, %32 : vector<8x8xi1>, vector<8x8xf32>
    %cst_12 = arith.constant dense<0xFF800000> : vector<8xf32>
    %34 = vector.multi_reduction <maximumf>, %33, %cst_12 [1] : vector<8x8xf32> to vector<8xf32>
    %35 = vector.shape_cast %34 : vector<8xf32> to vector<8x1xf32>
    %cst_13 = arith.constant 0.000000e+00 : f32
    %36 = vector.broadcast %cst_13 : f32 to vector<8x1xf32>
    %37 = arith.maximumf %35, %36 : vector<8x1xf32>
    %cst_14 = arith.constant -3.40282347E+38 : f32
    %38 = vector.broadcast %cst_14 : f32 to vector<8x8xf32>
    %39 = arith.select %23, %31, %38 : vector<8x8xi1>, vector<8x8xf32>
    %cst_15 = arith.constant dense<0xFF800000> : vector<8xf32>
    %40 = vector.multi_reduction <maximumf>, %39, %cst_15 [1] : vector<8x8xf32> to vector<8xf32>
    %41 = vector.shape_cast %40 : vector<8xf32> to vector<8x1xf32>
    %cst_16 = arith.constant 0.000000e+00 : f32
    %42 = vector.broadcast %cst_16 : f32 to vector<8x1xf32>
    %43 = arith.maximumf %41, %42 : vector<8x1xf32>
    %44 = vector.broadcast %37 : vector<8x1xf32> to vector<8x8xf32>
    %45 = arith.subf %27, %44 : vector<8x8xf32>
    %46 = vector.broadcast %43 : vector<8x1xf32> to vector<8x8xf32>
    %47 = arith.subf %31, %46 : vector<8x8xf32>
    %48 = arith.select %20, %45, %47 : vector<8x8xi1>, vector<8x8xf32>
    %49 = math.exp %48 : vector<8x8xf32>
    %cst_17 = arith.constant 0.000000e+00 : f32
    %50 = vector.broadcast %cst_17 : f32 to vector<8x8xf32>
    %51 = arith.select %20, %49, %50 : vector<8x8xi1>, vector<8x8xf32>
    %cst_18 = arith.constant dense<0.000000e+00> : vector<8xf32>
    %52 = vector.multi_reduction <add>, %51, %cst_18 [1] : vector<8x8xf32> to vector<8xf32>
    %53 = vector.shape_cast %52 : vector<8xf32> to vector<8x1xf32>
    %cst_19 = arith.constant 0.000000e+00 : f32
    %54 = vector.broadcast %cst_19 : f32 to vector<8x1xf32>
    %55 = arith.subf %54, %37 : vector<8x1xf32>
    %56 = math.exp %55 : vector<8x1xf32>
    %57 = arith.addf %53, %56 : vector<8x1xf32>
    %cst_20 = arith.constant 0.000000e+00 : f32
    %58 = vector.broadcast %cst_20 : f32 to vector<8x8xf32>
    %59 = arith.select %23, %49, %58 : vector<8x8xi1>, vector<8x8xf32>
    %cst_21 = arith.constant dense<0.000000e+00> : vector<8xf32>
    %60 = vector.multi_reduction <add>, %59, %cst_21 [1] : vector<8x8xf32> to vector<8xf32>
    %61 = vector.shape_cast %60 : vector<8xf32> to vector<8x1xf32>
    %cst_22 = arith.constant 0.000000e+00 : f32
    %62 = vector.broadcast %cst_22 : f32 to vector<8x1xf32>
    %63 = arith.subf %62, %43 : vector<8x1xf32>
    %64 = math.exp %63 : vector<8x1xf32>
    %65 = arith.addf %61, %64 : vector<8x1xf32>
    %cst_23 = arith.constant 1.000000e+00 : f32
    %cst_24 = arith.constant 0.000000e+00 : f32
    %66 = vector.broadcast %cst_23 : f32 to vector<8x8xf32>
    %67 = vector.broadcast %cst_24 : f32 to vector<8x8xf32>
    %68 = arith.select %20, %66, %67 : vector<8x8xi1>, vector<8x8xf32>
    %cst_25 = arith.constant dense<0xFF800000> : vector<8xf32>
    %69 = vector.multi_reduction <maximumf>, %68, %cst_25 [1] : vector<8x8xf32> to vector<8xf32>
    %cst_26 = arith.constant 0.000000e+00 : f32
    %70 = vector.broadcast %cst_26 : f32 to vector<8xf32>
    %71 = arith.cmpf ogt, %69, %70 : vector<8xf32>
    %72 = vector.shape_cast %71 : vector<8xi1> to vector<8x1xi1>
    %73 = math.log %57 : vector<8x1xf32>
    %74 = arith.addf %37, %73 : vector<8x1xf32>
    %cst_27 = arith.constant 0.000000e+00 : f32
    %75 = vector.broadcast %cst_27 : f32 to vector<8x1xf32>
    %76 = arith.select %72, %74, %75 : vector<8x1xi1>, vector<8x1xf32>
    %cst_28 = arith.constant 1.000000e+00 : f32
    %cst_29 = arith.constant 0.000000e+00 : f32
    %77 = vector.broadcast %cst_28 : f32 to vector<8x8xf32>
    %78 = vector.broadcast %cst_29 : f32 to vector<8x8xf32>
    %79 = arith.select %23, %77, %78 : vector<8x8xi1>, vector<8x8xf32>
    %cst_30 = arith.constant dense<0xFF800000> : vector<8xf32>
    %80 = vector.multi_reduction <maximumf>, %79, %cst_30 [1] : vector<8x8xf32> to vector<8xf32>
    %cst_31 = arith.constant 0.000000e+00 : f32
    %81 = vector.broadcast %cst_31 : f32 to vector<8xf32>
    %82 = arith.cmpf ogt, %80, %81 : vector<8xf32>
    %83 = vector.shape_cast %82 : vector<8xi1> to vector<8x1xi1>
    %84 = math.log %65 : vector<8x1xf32>
    %85 = arith.addf %43, %84 : vector<8x1xf32>
    %cst_32 = arith.constant 0.000000e+00 : f32
    %86 = vector.broadcast %cst_32 : f32 to vector<8x1xf32>
    %87 = arith.select %83, %85, %86 : vector<8x1xi1>, vector<8x1xf32>
    %88 = arith.addf %76, %87 : vector<8x1xf32>
    %cst_33 = arith.constant dense<0.000000e+00> : vector<1xf32>
    %89 = vector.multi_reduction <add>, %88, %cst_33 [0] : vector<8x1xf32> to vector<1xf32>
    %90 = vector.shape_cast %89 : vector<1xf32> to vector<1x1xf32>
    %c0_34 = arith.constant 0 : index
    %c0_35 = arith.constant 0 : index
    %c0_36 = arith.constant 0 : index
    %91 = vector.load %arg4[%c0_34, %c0_35, %c0_36] : memref<1x1x1xf32, #tpu.memory_space<vmem>>, vector<1x1x1xf32>
    %92 = vector.shape_cast %91 : vector<1x1x1xf32> to vector<1x1xf32>
    %93 = vector.shape_cast %90 : vector<1x1xf32> to vector<1x1x1xf32>
    tpu.vector_store %arg4[%c0_34, %c0_35, %c0_36], %93 {strides = array<i32>} : memref<1x1x1xf32, #tpu.memory_space<vmem>>, vector<1x1x1xf32>,
    return
  }
  func.func @transform_0(%arg0: i32) -> (i32, i32) {
    %c0_i32 = arith.constant 0 : i32
    %c0_i32_0 = arith.constant 0 : i32
    %c0_i32_1 = arith.constant 0 : i32
    return %c0_i32, %c0_i32_0 : i32, i32
  }
  func.func @transform_1(%arg0: i32) -> (i32, i32) {
    %c0_i32 = arith.constant 0 : i32
    %c0_i32_0 = arith.constant 0 : i32
    %c0_i32_1 = arith.constant 0 : i32
    return %c0_i32, %c0_i32_0 : i32, i32
  }
  func.func @transform_2(%arg0: i32) -> (i32, i32) {
    %c0_i32 = arith.constant 0 : i32
    %c0_i32_0 = arith.constant 0 : i32
    return %arg0, %c0_i32 : i32, i32
  }
  func.func @transform_3(%arg0: i32) -> (i32, i32, i32) {
    %c0_i32 = arith.constant 0 : i32
    %c0_i32_0 = arith.constant 0 : i32
    %c0_i32_1 = arith.constant 0 : i32
    return %arg0, %c0_i32, %c0_i32_0 : i32, i32, i32
  }
}

</mosaic_0001>

<bundles_post_ra>
// kernel: proxy_loss.1
= control target key start
LH: loop header
LB: loop body
LE: loop exit
PB: predicated region body
PF: predicated region fallthrough
CT: control target
= control target key end

     0   :  { %s456_s12 = smov 0   ;;  %s527_s0 = inlined_call_operand.vmem [shape: s32[1,8], index: 0, kind: input, shape index: {}]   ;;  %s528_s1 = inlined_call_operand.vmem [shape: f32[32,8], index: 1, kind: input, shape index: {}]   ;;  %s529_s2 = inlined_call_operand.vmem [shape: f32[16,32], index: 2, kind: input, shape index: {}]   ;;  %s530_s3 = inlined_call_operand.vmem [shape: f32[2,1,1], index: 3, kind: output, shape index: {}]  }
   0x1 LB: > { %s462_s13 = sadd.s32 4294967295, %s432_s12   ;;  %p379_p0 = scmp.ge.s32.totalorder %s432_s12, 1  ;;  %s432_s12 = sphi %s456_s12, %s13_s12  }
   0x2   : > { %p136_p1 = scmp.lt.s32.totalorder %s432_s12, 3 }
   0x4   : > { %p137_p2 = pnand %p379_p0, %p136_p1 }
   0x5   : > { %p157_p3 = scmp.lt.s32.totalorder (!%p137_p2), %s462_s13, 1  ;;  %s382_s27 = sshll.u32 (!%p137_p2), %s462_s13, 3 }
   0x6   : > { %140 = sbr.rel (%p137_p2) target bundleno = 710 (0x2c6), region = 32 }
   0xb   : > { %s468_s14 = scalar_select %p157_p3, %s462_s13, 1  ;;  %vm166_vm0 = vcmask 261120   ;;  %v176_v3 = vld [vmem:[%s528_s1 + $0x18] sm:$0xff]  ;;  %v434_v4 = vmov 0.0   ;;  %v175_v5 = vld [vmem:[%s528_s1 + $0x10] sm:$0xff]  ;;  %vm435_vm1 = vmmov 0   ;;  %v251_v12 = vlaneseq }
   0xc   : > { %393 = vmatprep.subr.mxu0 %v434_v4  ;;  %401 = vmatprep.mubr.msk.f32.mxu0 %vm435_vm1, %v434_v4  ;;  %v174_v6 = vld [vmem:[%s528_s1 + $0x8] sm:$0xff]  ;;  %v173_v7 = vld [vmem:[%s528_s1] sm:$0xff]  ;;  %v254_v14 = vstv %s382_s27  ;;  %vm270_vm7 = vcmask 64512   ;;  %vm326_vm10 = vcmask 0  }
   0xd   : > { %s380_s15 = sshll.u32 %s468_s14, 3  ;;  %394 = vmatpush3.msra.mxu0 %v176_v3  ;;  %v252_v13 = vshrl.u32 %v251_v12, 7  ;;  %v383_v16 = vld [vmem:[%s527_s0] ss:$0 sm:$0xff]  ;;  %s163_s5 = scalar_lea.vmem %s530_s3, %s468_s14 }
   0xe   : > { %s160_s18 = scalar_lea.vmem %s529_s2, %s380_s15  ;;  %395 = vmatprep.subr.mxu0 %v434_v4 }
   0xf   : > { %v164_v0 = vld [vmem:[%s160_s18] sm:$0xff]  ;;  %396 = vmatpush3.msra.mxu0 %v175_v5  ;;  %v255_v15 = vadd.s32 %v254_v14, %v252_v13 }
  0x10   : > { %v165_v1 = vmul.f32 %v164_v0, %v164_v0  ;;  %397 = vmatprep.subr.mxu0 %v434_v4 }
  0x11   : > { %398 = vmatpush3.msra.mxu0 %v174_v6  ;;  %vm256_vm2 = vcmp.lt.s32.totalorder %v255_v15, 16  ;;  %vm261_vm3 = vcmp.eq.s32.totalorder %v383_v16, %v255_v15  ;;  %vm263_vm4 = vcmp.ne.s32.totalorder %v383_v16, %v255_v15 }
  0x12   : > { %v167_v2 = vsel %vm166_vm0, %v165_v1, 0.0  ;;  %399 = vmatprep.subr.mxu0 %v434_v4  ;;  %vm492_vm5 = vmand %vm261_vm3, %vm256_vm2 }
  0x13   : > { %168 = vadd.xlane.f32.xlu0 %v167_v2  ;;  %400 = vmatpush3.msra.mxu0 %v173_v7  ;;  %vm496_vm6 = vmand %vm263_vm4, %vm256_vm2  ;;  %v301_v41 = vsel %vm492_vm5, 1.0, %v434_v4 }
  0x14   : > { %v310_v40 = vsel %vm496_vm6, 1.0, %v434_v4  ;;  %v302_v45 = vsel %vm270_vm7, %v301_v41, -inf }
  0x15   : > { %v311_v44 = vsel %vm270_vm7, %v310_v40, -inf }
  0x9c   : > { %v169_v8 = vpop.xlane.xlu0 %168 }
  0x9d   : > { %v170_v9 = vmax.f32 %v169_v8, 1e-24 }
  0x9f   : > { %414 = vrsqrt.f32 %v170_v9 }
  0xac   : > { %v415_v10 = vpop.eup %414 }
  0xad   : > { %v172_v11 = vmul.f32 %v415_v10, %v164_v0 }
  0xaf   : > { %402 = vmatmul.mubr.msk.f32.vlgmr.msra.gmra.mxu0 %vm166_vm0, %v172_v11 }
 0x16f   : > { %v246_v17 = vpop.f32.mrf.mxu0 }
 0x170   : > { %v384_v18 = vadd.f32 -0.1, %v246_v17  ;;  %v385_v19 = vadd.f32 0.1, %v246_v17 }
 0x171   : > { %v403_v21 = vpop.f32.mrf.mxu0 }
 0x172   : > { %v266_v23 = vmul.f32 -32.0, %v384_v18  ;;  %v268_v24 = vmul.f32 32.0, %v385_v19 }
 0x174   : > { %v275_v25 = vsel %vm496_vm6, %v268_v24, -3.4028235e+38  ;;  %v269_v26 = vsel %vm492_vm5, %v266_v23, -3.4028235e+38 }
 0x175   : > { %v276_v27 = vsel %vm270_vm7, %v275_v25, -inf  ;;  %v271_v28 = vsel %vm270_vm7, %v269_v26, -inf }
 0x176   : > { %277 = vmax.xlane.f32.xlu1 %v276_v27  ;;  %272 = vmax.xlane.f32.xlu0 %v271_v28 }
 0x1ff   : > { %v278_v29 = vpop.xlane.xlu1 %277  ;;  %v273_v30 = vpop.xlane.xlu0 %272 }
 0x200   : > { %v279_v31 = vmax.f32 %v278_v29, 0.0  ;;  %v274_v32 = vmax.f32 %v273_v30, 0.0 }
 0x202   : > { %v281_v33 = vsub.f32 %v268_v24, %v279_v31  ;;  %v280_v34 = vsub.f32 %v266_v23, %v274_v32  ;;  %v297_v46 = vsub.f32 0.0, %v279_v31  ;;  %v289_v47 = vsub.f32 0.0, %v274_v32 }
 0x204   : > { %v282_v35 = vsel %vm492_vm5, %v280_v34, %v281_v33  ;;  %v298_v48 = vmul.f32 1.442695, %v297_v46  ;;  %v290_v49 = vmul.f32 1.442695, %v289_v47 }
 0x205   : > { %v283_v36 = vmul.f32 1.442695, %v282_v35 }
 0x207   : > { %416 = vpow2.f32 %v283_v36 }
 0x208   : > { %418 = vpow2.f32 %v298_v48 }
 0x209   : > { %420 = vpow2.f32 %v290_v49 }
 0x214   : > { %v417_v37 = vpop.eup %416 }
 0x215   : > { %v293_v38 = vsel %vm496_vm6, %v417_v37, 0.0  ;;  %v285_v39 = vsel %vm492_vm5, %v417_v37, 0.0  ;;  %v419_v50 = vpop.eup %418 }
 0x216   : > { %v294_v42 = vsel %vm270_vm7, %v293_v38, 0.0  ;;  %v286_v43 = vsel %vm270_vm7, %v285_v39, 0.0  ;;  %v421_v51 = vpop.eup %420 }
 0x217   : > { %295 = vadd.xlane.f32.xlu0 %v294_v42  ;;  %287 = vadd.xlane.f32.xlu1 %v286_v43 }
 0x21b   : > { %312 = vmax.xlane.f32.xlu0 %v311_v44  ;;  %303 = vmax.xlane.f32.xlu1 %v302_v45 }
 0x2a0   : > { %v296_v52 = vpop.xlane.xlu0 %295  ;;  %v288_v53 = vpop.xlane.xlu1 %287 }
 0x2a1   : > { %v300_v54 = vadd.f32 %v419_v50, %v296_v52  ;;  %v292_v55 = vadd.f32 %v421_v51, %v288_v53 }
 0x2a3   : > { %422 = vlog2.f32 %v300_v54 }
 0x2a4   : > { %424 = vlog2.f32 %v292_v55  ;;  %v313_v56 = vpop.xlane.xlu0 %312  ;;  %v304_v58 = vpop.xlane.xlu1 %303 }
 0x2a5   : > { %vm314_vm8 = vcmp.gt.f32.partialorder %v313_v56, 0.0  ;;  %vm305_vm9 = vcmp.gt.f32.partialorder %v304_v58, 0.0 }
 0x2b0   : > { %v423_v57 = vpop.eup %422 }
 0x2b1   : > { %v425_v59 = vpop.eup %424  ;;  %v316_v60 = vmul.f32 0.6931472, %v423_v57 }
 0x2b2   : > { %v307_v61 = vmul.f32 0.6931472, %v425_v59 }
 0x2b3   : > { %v317_v62 = vadd.f32 %v316_v60, %v279_v31 }
 0x2b4   : > { %v308_v63 = vadd.f32 %v307_v61, %v274_v32 }
 0x2b5   : > { %v318_v0 = vsel %vm314_vm8, %v317_v62, 0.0 }
 0x2b6   : > { %v309_v1 = vsel %vm305_vm9, %v308_v63, 0.0 }
 0x2b7   : > { %v319_v2 = vadd.f32 %v318_v0, %v309_v1 }
 0x2b9   : > { %v320_v3 = vrot.slane %v319_v2, 4 }
 0x2bb   : > { %v321_v4 = vadd.f32 %v320_v3, %v319_v2 }
 0x2bd   : > { %v322_v5 = vrot.slane %v321_v4, 2 }
 0x2bf   : > { %v323_v6 = vadd.f32 %v322_v5, %v321_v4 }
 0x2c1   : > { %v324_v7 = vrot.slane %v323_v6, 1 }
 0x2c3   : > { %v325_v8 = vadd.f32 %v324_v7, %v323_v6 }
 0x2c5   : > { %327 = vst.msk [vmem:[%s163_s5] sm:$0x1] %vm326_vm10, %v325_v8 }
 0x2c6 PF: > { %s13_s12 = sadd.s32 1, %s432_s12  }
 0x2c7   : > { %p10_p4 = scmp.ge.s32.totalorder %s13_s12, 4  }
 0x2c9   :  { %12 = sbr.rel (!%p10_p4) target bundleno = 1 (0x1), region = 62 }

</bundles_post_ra>
